<compile_context>
chip_gen: v7x
topology: tpu7x:2x2x1
jax: 0.10.0
libtpu: 0.0.40
codegen_flags: <defaults>
</compile_context>

<pallas_src>
import jax
import jax.numpy as jnp
from jax.experimental import pallas as pl
from jax.experimental.pallas import tpu as pltpu


_MIN_KERNEL_ELEMENTS = 65536               # below this, fused XLA FMA beats a kernel launch
_LANE_COL_CHOICES = (1024, 512, 256, 128)  # lane-dense widths (unmasked vst)
_TARGET_TILE_BYTES = 4 << 20               # ~4 MiB tiles -> ~16 MiB in flight double-buffered
_MIN_GRID_STEPS = 4                        # keep both v7x TensorCores busy


def _affine_kernel(wb_ref, x_ref, o_ref):
    """y = x * w_eff + b_eff. Upcast to f32 in-vreg; store back in caller dtype."""
    x = x_ref[...].astype(jnp.float32)
    o_ref[...] = (x * wb_ref[0] + wb_ref[1]).astype(o_ref.dtype)


def _fold_layers(weights, biases):
    """Fold y = (((x*w0+b0)*w1+b1)...) into y = x*w_eff + b_eff (O(L) scalars)."""
    w_eff = jnp.asarray(1.0, jnp.float32)
    b_eff = jnp.asarray(0.0, jnp.float32)
    for i in range(weights.shape[0]):
        w_i = weights[i].astype(jnp.float32)
        b_i = biases[i].astype(jnp.float32)
        w_eff = w_eff * w_i
        b_eff = b_eff * w_i + b_i
    return jnp.stack([w_eff, b_eff])  # (2,) -> SMEM


def _round_up(n, m):
    return -(-n // m) * m


def _choose_layout(total, itemsize):
    """Pick a free-view (rows, cols) factorization and a row-tile size.

    cols must divide `total` so the slab reshape is a zero-copy view; returns
    None when no lane-dense factorization exists (caller falls back to XLA).
    """
    for cols in _LANE_COL_CHOICES:
        if total % cols == 0:
            break
    else:
        return None
    rows = total // cols
    if rows < 8:
        return None

    block_rows = max(8, (_TARGET_TILE_BYTES // (cols * itemsize)) // 8 * 8)
    block_rows = min(block_rows, _round_up(rows, 8))
    # Ensure several grid steps so the "parallel" axis feeds both v7x cores.
    if pl.cdiv(rows, block_rows) < _MIN_GRID_STEPS:
        block_rows = max(8, _round_up(pl.cdiv(rows, _MIN_GRID_STEPS), 8))
    return rows, cols, block_rows


def dummy_llm_backbone_forward(x, weights, biases):
    """x: (..., 1). weights/biases: (num_layers,) scalar Linear(1,1) params."""
    orig_shape = x.shape
    assert orig_shape[-1] == 1, "DummyTransformerLayer is Linear(1, 1)"

    wb = _fold_layers(weights, biases)

    total = 1
    for d in orig_shape:
        total *= int(d)

    layout = None
    if total >= _MIN_KERNEL_ELEMENTS:
        layout = _choose_layout(total, x.dtype.itemsize)

    if layout is None:
        # Tiny / ragged inputs: one fused XLA FMA is already at HBM roofline;
        # a pallas_call would only add launch + plumbing overhead.
        y = x.astype(jnp.float32) * wb[0] + wb[1]
        return y.astype(x.dtype)

    rows, cols, block_rows = layout
    slab = x.reshape(rows, cols)          # free view: cols divides total
    grid = (pl.cdiv(rows, block_rows),)   # any ragged last block handled by Pallas

    out = pl.pallas_call(
        _affine_kernel,
        out_shape=jax.ShapeDtypeStruct((rows, cols), x.dtype),
        grid_spec=pltpu.PrefetchScalarGridSpec(
            num_scalar_prefetch=0,
            grid=grid,
            in_specs=[
                pl.BlockSpec(memory_space=pltpu.MemorySpace.SMEM),     # (w_eff, b_eff)
                pl.BlockSpec((block_rows, cols), lambda i: (i, 0)),    # x tile
            ],
            out_specs=pl.BlockSpec((block_rows, cols), lambda i: (i, 0)),
        ),
        compiler_params=pltpu.CompilerParams(
            dimension_semantics=("parallel",),
            vmem_limit_bytes=48 << 20,
        ),
    )(wb, slab)

    return out.reshape(orig_shape)        # free view, same dtype — no post-copy


def _reference_forward(x, weights, biases):
    y = x.astype(jnp.float32)
    for i in range(weights.shape[0]):
        y = y * weights[i] + biases[i]
    return y.astype(x.dtype)


if __name__ == "__main__":
    num_layers = 2
    key = jax.random.PRNGKey(0)
    kx, kw, kb = jax.random.split(key, 3)

    # nn.Linear(1,1) => scalar w, scalar b per layer.
    weights = jax.random.uniform(kw, (num_layers,), jnp.float32, minval=-1.0, maxval=1.0)
    biases = jax.random.uniform(kb, (num_layers,), jnp.float32, minval=-1.0, maxval=1.0)

    # Small shape from the test module (fast path: fused XLA FMA, no kernel launch).
    x_small = jax.random.normal(kx, (2, 8, 1), dtype=jnp.float32)
    out_small = jax.block_until_ready(dummy_llm_backbone_forward(x_small, weights, biases))
    ref_small = _reference_forward(x_small, weights, biases)
    assert out_small.shape == x_small.shape
    assert jnp.allclose(out_small, ref_small, atol=1e-6, rtol=1e-6)

    # Larger input to exercise the Pallas streaming-FMA path (f32).
    x_big = jax.random.normal(kx, (4, 65536, 1), dtype=jnp.float32)
    out_big = jax.block_until_ready(dummy_llm_backbone_forward(x_big, weights, biases))
    ref_big = _reference_forward(x_big, weights, biases)
    assert out_big.shape == x_big.shape
    # Folding the affine chain changes association order by ~1 ulp/layer.
    assert jnp.allclose(out_big, ref_big, atol=1e-5, rtol=1e-5)

    # bf16 stays bf16 through HBM; the f32 upcast/downcast happens in-vreg in the kernel.
    x_bf16 = x_big.astype(jnp.bfloat16)
    out_bf16 = jax.block_until_ready(dummy_llm_backbone_forward(x_bf16, weights, biases))
    ref_bf16 = _reference_forward(x_bf16, weights, biases)
    assert out_bf16.dtype == jnp.bfloat16
    assert jnp.allclose(out_bf16.astype(jnp.float32), ref_bf16.astype(jnp.float32),
                        atol=5e-2, rtol=5e-2)

    print("KERNEL_OK")
</pallas_src>

<mosaic_0001>
module attributes {stable_mosaic.version = 11 : i64} {
  func.func @_affine_kernel(%arg0: i32, %arg1: memref<2xf32, #tpu.memory_space<smem>>, %arg2: memref<64x1024xf32, #tpu.memory_space<vmem>>, %arg3: memref<64x1024xf32, #tpu.memory_space<vmem>>) attributes {dimension_semantics = [#tpu.dimension_semantics<parallel>], iteration_bounds = array<i64: 4>, scalar_prefetch = 0 : i64, scratch_operands = 0 : i64, tpu.core_type = #tpu.core_type<tc>, window_params = [{transform_indices = @transform_0, window_bounds = array<i64: 2>}, {transform_indices = @transform_1, window_bounds = array<i64: 64, 1024>}, {transform_indices = @transform_2, window_bounds = array<i64: 64, 1024>}]} {
    %c0 = arith.constant 0 : index
    %c0_0 = arith.constant 0 : index
    %0 = vector.load %arg2[%c0, %c0_0] : memref<64x1024xf32, #tpu.memory_space<vmem>>, vector<64x1024xf32>
    %c0_1 = arith.constant 0 : index
    %1 = memref.load %arg1[%c0_1] : memref<2xf32, #tpu.memory_space<smem>>
    %2 = vector.broadcast %1 : f32 to vector<64x1024xf32>
    %3 = arith.mulf %0, %2 : vector<64x1024xf32>
    %c1 = arith.constant 1 : index
    %4 = memref.load %arg1[%c1] : memref<2xf32, #tpu.memory_space<smem>>
    %5 = vector.broadcast %4 : f32 to vector<64x1024xf32>
    %6 = arith.addf %3, %5 : vector<64x1024xf32>
    %c0_2 = arith.constant 0 : index
    %c0_3 = arith.constant 0 : index
    %7 = vector.load %arg3[%c0_2, %c0_3] : memref<64x1024xf32, #tpu.memory_space<vmem>>, vector<64x1024xf32>
    tpu.vector_store %arg3[%c0_2, %c0_3], %6 {strides = array<i32>} : memref<64x1024xf32, #tpu.memory_space<vmem>>, vector<64x1024xf32>,
    return
  }
  func.func @transform_0(%arg0: i32) -> i32 {
    %c0_i32 = arith.constant 0 : i32
    %c0_i32_0 = arith.constant 0 : i32
    return %c0_i32 : i32
  }
  func.func @transform_1(%arg0: i32) -> (i32, i32) {
    %c0_i32 = arith.constant 0 : i32
    %c0_i32_0 = arith.constant 0 : i32
    return %arg0, %c0_i32 : i32, i32
  }
  func.func @transform_2(%arg0: i32) -> (i32, i32) {
    %c0_i32 = arith.constant 0 : i32
    %c0_i32_0 = arith.constant 0 : i32
    return %arg0, %c0_i32 : i32, i32
  }
}

</mosaic_0001>

<bundles_post_ra>
// kernel: tpu_custom_call.1
= control target key start
LH: loop header
LB: loop body
LE: loop exit
PB: predicated region body
PF: predicated region fallthrough
CT: control target
= control target key end

     0   :  { %7 = vsyncpa [#allocation5], 0  ;;  %s1215_s0 = inlined_call_operand.hbm [shape: f32[2], index: 0, kind: input, shape index: {}]   ;;  %s1216_s1 = inlined_call_operand.hbm [shape: f32[256,1024], index: 1, kind: input, shape index: {}]   ;;  %s1217_s2 = inlined_call_operand.hbm [shape: f32[256,1024], index: 2, kind: output, shape index: {}]  }
   0x1   :  { %8 = vsyncpa [#allocation3], 0 }
   0x2   :  { %10 = vsyncpa [#allocation3 + $0x1], 0 }
   0x3   :  { %11 = vsyncpa [#allocation4], 0 }
   0x4   :  { %13 = vsyncpa [#allocation4 + $0x1], 0  ;;  %s758_s9 = smov 0   ;;  %s760_s10 = smov 0  }
   0x5   :  { %s762_s11 = smov 0   ;;  %s764_s12 = smov 0  }
   0x6 LB: > { %s779_s13 = sadd.s32 4294967295, %s734_s12   ;;  %s537_s14 = sadd.s32 4294967294, %s734_s12   ;;  %s734_s12 = sphi %s764_s12, %s1235_s12   ;;  %s730_s11 = sphi %s762_s11, %s1234_s11   ;;  %s726_s10 = sphi %s760_s10, %s1233_s10   ;;  %s722_s9 = sphi %s758_s9, %s1232_s9  }
   0x7   : > { %s783_s15 = sadd.s32 1, %s734_s12   ;;  %s47_s16 = sadd.s32 1, %s730_s11 }
   0x8   : > { %s44_s17 = ssub.s32 %s734_s12, %s783_s15  ;;  %p54_p0 = scmp.ne.s32.totalorder %s730_s11, %s726_s10 }
   0x9   : > { %p45_p1 = scmp.eq.s32.totalorder %s44_s17, 0  ;;  %p55_p2 = scmp.eq.s32.totalorder %s734_s12, 0 }
   0xa   : > { %p60_p3 = scmp.ne.s32.totalorder %s726_s10, %s722_s9  ;;  %p1219_p4 = scmp.eq.s32.totalorder %s779_s13, 0 }
   0xb   : > { %s795_s18 = scalar_select %p45_p1, %s730_s11, %s47_s16  }
   0xc   : > { %p797_p5 = por %p55_p2, %p54_p0  ;;  %p803_p6 = por %p1219_p4, %p60_p3 }
   0xd   : > { %p84_p7 = scmp.eq.s32.totalorder %s779_s13, 3  ;;  %p90_p8 = scmp.eq.s32.totalorder %s537_s14, 3 }
   0xe   : > { %s1222_s20 = scalar_select %p803_p6, 1, 0 }
   0xf   : > { %p538_p9 = scmp.ge.s32.totalorder %s734_s12, 1  ;;  %p97_p10 = scmp.lt.s32.totalorder %s734_s12, 5 }
  0x10   : > { %p810_p11 = por %p84_p7, %p54_p0  ;;  %p814_p12 = por %p90_p8, %p60_p3 }
  0x11   : > { %p818_p13 = pnand %p538_p9, %p97_p10  ;;  %p581_p2 = scmp.lt.s32.totalorder %s734_s12, 4 }
  0x12   : > { %s1223_s21 = scalar_select %p810_p11, 1, 0 }
  0x13   : > { %s1224_s22 = scalar_select %p814_p12, 1, 0 }
  0x14   : > { %p568_p1 = pneg %p818_p13  ;;  %s119_s24 = sand.u32 1, %s730_s11  }
  0x15   : > { %s557_s25 = sshll.u32 %s734_s12, 13  ;;  %p831_p0 = pnand %p581_p2, %p797_p5 }
  0x16   : > { %p569_p6 = pnand %p568_p1, %p1219_p4  ;;  %s541_s27 = sshll.u32 %s119_s24, 9 }
  0x17   : > { %s621_s30 = scalar_lea.hbm %s1215_s0, 16 }
  0x18   : > { %p622_p3 = scmp.ne.s32.totalorder %s1215_s0, %s621_s30  ;;  %p623_p7 = pneg %p569_p6 }
  0x19   : > { %p628_p10 = scmp.lt.u32.totalorder %s621_s30, %s1215_s0 }
  0x1a   : > { %p624_p8 = pnand %p623_p7, %p622_p3 }
  0x1c   : > { %p625_p9 = pneg %p624_p8 }
  0x1e   : > { %p630_p5 = pnand %p628_p10, %p625_p9 }
  0x20   : > { %633 = shalt.err (!%p630_p5)
}
  0x21   : > { %s736_s7 = smov [#allocation2]   ;;  %s850_s19 = scalar_lea.hbm %s1216_s1, %s557_s25 }
  0x22   : > { %571 = dma.hbm_to_smem (!%p569_p6), %s1215_s0, 16, %s736_s7, [#allocation5]  }
  0x23   : > { %s123_s28 = scalar_lea.vmem [#allocation6], %s541_s27  ;;  %s854_s30 = scalar_lea.sflag [#allocation3], %s119_s24 }
  0x24   : > { %s131_s29 = sshll.u32 %s123_s28, 4  ;;  %s634_s3 = scalar_lea.hbm %s850_s19, 8192  ;;  %s852_s29 = int_to_ptr.vmem [resolvable:$true] %s131_s29 }
  0x25   : > { %p635_p1 = scmp.ne.s32.totalorder %s850_s19, %s634_s3  ;;  %p636_p2 = pneg %p831_p0 }
  0x26   : > { %s639_s5 = scalar_lea.hbm %s1216_s1, 32768  ;;  %p640_p7 = scmp.lt.u32.totalorder %s850_s19, %s1216_s1 }
  0x27   : > { %p637_p6 = pnand %p636_p2, %p635_p1  ;;  %p641_p8 = scmp.lt.u32.totalorder %s639_s5, %s634_s3 }
  0x28   : > { %p643_p10 = scmp.lt.u32.totalorder %s634_s3, %s850_s19 }
  0x29   : > { %p638_p3 = pneg %p637_p6  ;;  %p642_p9 = por %p641_p8, %p640_p7 }
  0x2b   : > { %p644_p5 = por %p643_p10, %p642_p9 }
  0x2d   : > { %p645_p4 = pnand %p644_p5, %p638_p3 }
  0x2f   : > { %648 = shalt.err (!%p645_p4)
}
  0x30   : > { %s649_s24 = scalar_lea.vmem %s852_s29, 8192  ;;  %s737_s27 = smov [#allocation6]  }
  0x31   : > { %p650_p1 = scmp.ne.s32.totalorder %s852_s29, %s649_s24  ;;  %s654_s8 = sshll.u32 %s737_s27, 4  ;;  %s655_s8 = int_to_ptr.vmem [resolvable:$false] %s654_s8 }
  0x32   : > { %s656_s14 = scalar_lea.vmem %s655_s8, 16384  ;;  %p657_p11 = scmp.lt.s32.totalorder %s852_s29, %s655_s8 }
  0x33   : > { %p652_p6 = pnand %p650_p1, %p636_p2  ;;  %p658_p7 = scmp.lt.s32.totalorder %s656_s14, %s649_s24 }
  0x35   : > { %p653_p12 = pneg %p652_p6  ;;  %p659_p8 = por %p658_p7, %p657_p11 }
  0x37   : > { %p660_p9 = pnand %p659_p8, %p653_p12 }
  0x39   : > { %663 = shalt.err (!%p660_p9)
}
  0x3a   : > { %s738_s16 = smov 1024   ;;  %s739_s17 = smov 64  }
  0x3b   : > { %575 = dma.hbm_to_vmem [thread:$0]  (!%p831_p0), %s850_s19, 8192, %s852_s29, %s854_s30, %s738_s16, %s738_s16, %s739_s17  }
  0x3c   : > { %143 = sbr.rel (%p818_p13) target bundleno = 137 (0x89), region = 28  ;;  %p1227_p4 = scmp.eq.s32.totalorder (!%p818_p13), %s779_s13, 0 }
  0x43   : > { %709 = dma.done.wait (%p1227_p4), [#allocation5], 16   ;;  %p1228_p2 = pmov %p1227_p4 }
  0x44   : > { %s889_s28 = sand.u32 1, %s726_s10   ;;  %p1229_p11 = scmp.ne.s32.totalorder %s1222_s20, 0 }
  0x45   : > { %711 = vsyncadd (%p1228_p2), [#allocation5], 4294967280  ;;  %s547_s3 = sshll.u32 %s889_s28, 9  ;;  %s150_s25 = scalar_lea.sflag [#allocation3], %s889_s28 }
  0x46   : > { %s895_s26 = scalar_lea.vmem [#allocation6], %s547_s3 }
  0x47   : > { %713 = dma.done.wait (%p1229_p11), %s150_s25, 8192  }
  0x48   : > { %715 = vsyncadd (%p1229_p11), %s150_s25, 4294959104 }
  0x49   : > { %158 = sfence }
  0x4a   : > { %s241_s23 = sld [smem:[#allocation2]]  ;;  %s549_s19 = sld [smem:[#allocation2 + $0x1]]  ;;  %v177_v0 = vld [vmem:[%s895_s26] sm:$0xff]  ;;  %v178_v1 = vld [vmem:[%s895_s26 + $0x8] sm:$0xff]  ;;  %v179_v2 = vld [vmem:[%s895_s26 + $0x10] sm:$0xff] }
  0x4b   : > { %v180_v3 = vld [vmem:[%s895_s26 + $0x18] sm:$0xff]  ;;  %v181_v4 = vld [vmem:[%s895_s26 + $0x20] sm:$0xff]  ;;  %v182_v5 = vld [vmem:[%s895_s26 + $0x28] sm:$0xff]  ;;  %s938_s20 = scalar_lea.vmem [#allocation7], %s547_s3  ;;  %s559_s29 = sshll.u32 %s779_s13, 13 }
  0x4c   : > { %v183_v6 = vld [vmem:[%s895_s26 + $0x30] sm:$0xff]  ;;  %v184_v8 = vld [vmem:[%s895_s26 + $0x38] sm:$0xff]  ;;  %v185_v13 = vld [vmem:[%s895_s26 + $0x40] sm:$0xff]  ;;  %s452_s30 = sshll.u32 %s938_s20, 4  ;;  %s1161_s5 = scalar_lea.hbm %s1217_s2, %s559_s29  ;;  %s1163_s30 = int_to_ptr.vmem [resolvable:$true] %s452_s30 }
  0x4d   : > { %v186_v18 = vld [vmem:[%s895_s26 + $0x48] sm:$0xff]  ;;  %v187_v19 = vld [vmem:[%s895_s26 + $0x50] sm:$0xff]  ;;  %v188_v20 = vld [vmem:[%s895_s26 + $0x58] sm:$0xff]  ;;  %s438_s6 = scalar_lea.sflag [#allocation4], %s889_s28  ;;  %s664_s7 = scalar_lea.vmem %s1163_s30, 8192 }
  0x4e   : > { %v189_v25 = vld [vmem:[%s895_s26 + $0x60] sm:$0xff]  ;;  %v190_v26 = vld [vmem:[%s895_s26 + $0x68] sm:$0xff]  ;;  %v191_v27 = vld [vmem:[%s895_s26 + $0x70] sm:$0xff]  ;;  %p665_p12 = scmp.ne.s32.totalorder %s1163_s30, %s664_s7  ;;  %p1230_p13 = scmp.ne.s32.totalorder %s1223_s21, 0 }
  0x4f   : > { %v192_v32 = vld [vmem:[%s895_s26 + $0x78] sm:$0xff]  ;;  %v193_v37 = vld [vmem:[%s895_s26 + $0x80] sm:$0xff]  ;;  %v194_v42 = vld [vmem:[%s895_s26 + $0x88] sm:$0xff]  ;;  %s740_s24 = smov [#allocation7]  }
  0x50   : > { %v908_v7 = vstv %s241_s23  ;;  %v912_v10 = vstv %s549_s19  ;;  %v195_v43 = vld [vmem:[%s895_s26 + $0x90] sm:$0xff]  ;;  %v196_v44 = vld [vmem:[%s895_s26 + $0x98] sm:$0xff]  ;;  %p666_p0 = pnand %p665_p12, %p1230_p13  ;;  %s668_s27 = sshll.u32 %s740_s24, 4  ;;  %s669_s27 = int_to_ptr.vmem [resolvable:$false] %s668_s27 }
  0x51   : > { %v243_v9 = vmul.f32 %v908_v7, %v177_v0  ;;  %v244_v11 = vmul.f32 %v908_v7, %v178_v1  ;;  %v245_v12 = vmul.f32 %v908_v7, %v179_v2  ;;  %v246_v14 = vmul.f32 %v908_v7, %v180_v3  ;;  %v197_v49 = vld [vmem:[%s895_s26 + $0xa0] sm:$0xff]  ;;  %v198_v50 = vld [vmem:[%s895_s26 + $0xa8] sm:$0xff]  ;;  %v199_v51 = vld [vmem:[%s895_s26 + $0xb0] sm:$0xff]  ;;  %s670_s8 = scalar_lea.vmem %s669_s27, 16384  ;;  %p671_p10 = scmp.lt.s32.totalorder %s1163_s30, %s669_s27 }
  0x52   : > { %v247_v15 = vmul.f32 %v908_v7, %v181_v4  ;;  %v248_v16 = vmul.f32 %v908_v7, %v182_v5  ;;  %v249_v17 = vmul.f32 %v908_v7, %v183_v6  ;;  %v250_v24 = vmul.f32 %v908_v7, %v184_v8  ;;  %v200_v56 = vld [vmem:[%s895_s26 + $0xb8] sm:$0xff]  ;;  %v201_v61 = vld [vmem:[%s895_s26 + $0xc0] sm:$0xff]  ;;  %v202_v2 = vld [vmem:[%s895_s26 + $0xc8] sm:$0xff]  ;;  %p667_p3 = pneg %p666_p0  ;;  %p672_p5 = scmp.lt.s32.totalorder %s670_s8, %s664_s7 }
  0x53   : > { %v309_v21 = vadd.f32 %v912_v10, %v243_v9  ;;  %v310_v22 = vadd.f32 %v912_v10, %v244_v11  ;;  %v311_v23 = vadd.f32 %v912_v10, %v245_v12  ;;  %v312_v28 = vadd.f32 %v912_v10, %v246_v14  ;;  %v203_v3 = vld [vmem:[%s895_s26 + $0xd0] sm:$0xff]  ;;  %v204_v4 = vld [vmem:[%s895_s26 + $0xd8] sm:$0xff]  ;;  %v205_v11 = vld [vmem:[%s895_s26 + $0xe0] sm:$0xff] }
  0x54   : > { %v313_v29 = vadd.f32 %v912_v10, %v247_v15  ;;  %v314_v30 = vadd.f32 %v912_v10, %v248_v16  ;;  %v315_v31 = vadd.f32 %v912_v10, %v249_v17  ;;  %v316_v33 = vadd.f32 %v912_v10, %v250_v24  ;;  %v206_v12 = vld [vmem:[%s895_s26 + $0xe8] sm:$0xff]  ;;  %p673_p1 = por %p672_p5, %p671_p10 }
  0x55   : > { %373 = vst [vmem:[%s938_s20] sm:$0xff] %v309_v21  ;;  %374 = vst [vmem:[%s938_s20 + $0x8] sm:$0xff] %v310_v22  ;;  %v251_v34 = vmul.f32 %v908_v7, %v185_v13  ;;  %v252_v35 = vmul.f32 %v908_v7, %v186_v18  ;;  %v253_v36 = vmul.f32 %v908_v7, %v187_v19  ;;  %v207_v13 = vld [vmem:[%s895_s26 + $0xf0] sm:$0xff]  ;;  %v208_v18 = vld [vmem:[%s895_s26 + $0xf8] sm:$0xff] }
  0x56   : > { %375 = vst [vmem:[%s938_s20 + $0x10] sm:$0xff] %v311_v23  ;;  %376 = vst [vmem:[%s938_s20 + $0x18] sm:$0xff] %v312_v28  ;;  %v254_v38 = vmul.f32 %v908_v7, %v188_v20  ;;  %v255_v39 = vmul.f32 %v908_v7, %v189_v25  ;;  %v256_v40 = vmul.f32 %v908_v7, %v190_v26  ;;  %v209_v23 = vld [vmem:[%s895_s26 + $0x100] sm:$0xff]  ;;  %v210_v28 = vld [vmem:[%s895_s26 + $0x108] sm:$0xff]  ;;  %p674_p6 = pnand %p673_p1, %p667_p3 }
  0x57   : > { %377 = vst [vmem:[%s938_s20 + $0x20] sm:$0xff] %v313_v29  ;;  %378 = vst [vmem:[%s938_s20 + $0x28] sm:$0xff] %v314_v30  ;;  %v257_v41 = vmul.f32 %v908_v7, %v191_v27  ;;  %v317_v45 = vadd.f32 %v912_v10, %v251_v34  ;;  %v318_v46 = vadd.f32 %v912_v10, %v252_v35  ;;  %v211_v29 = vld [vmem:[%s895_s26 + $0x110] sm:$0xff]  ;;  %v212_v30 = vld [vmem:[%s895_s26 + $0x118] sm:$0xff] }
  0x58   : > { %379 = vst [vmem:[%s938_s20 + $0x30] sm:$0xff] %v315_v31  ;;  %380 = vst [vmem:[%s938_s20 + $0x38] sm:$0xff] %v316_v33  ;;  %v319_v47 = vadd.f32 %v912_v10, %v253_v36  ;;  %v258_v48 = vmul.f32 %v908_v7, %v192_v32  ;;  %v320_v52 = vadd.f32 %v912_v10, %v254_v38  ;;  %v213_v35 = vld [vmem:[%s895_s26 + $0x120] sm:$0xff]  ;;  %v214_v36 = vld [vmem:[%s895_s26 + $0x128] sm:$0xff] }
  0x59   : > { %v321_v53 = vadd.f32 %v912_v10, %v255_v39  ;;  %v322_v54 = vadd.f32 %v912_v10, %v256_v40  ;;  %v323_v55 = vadd.f32 %v912_v10, %v257_v41  ;;  %381 = vst [vmem:[%s938_s20 + $0x40] sm:$0xff] %v317_v45  ;;  %382 = vst [vmem:[%s938_s20 + $0x48] sm:$0xff] %v318_v46 }
  0x5a   : > { %383 = vst [vmem:[%s938_s20 + $0x50] sm:$0xff] %v319_v47  ;;  %v324_v57 = vadd.f32 %v912_v10, %v258_v48  ;;  %v259_v58 = vmul.f32 %v908_v7, %v193_v37  ;;  %v260_v59 = vmul.f32 %v908_v7, %v194_v42  ;;  %v261_v60 = vmul.f32 %v908_v7, %v195_v43  ;;  %v215_v37 = vld [vmem:[%s895_s26 + $0x130] sm:$0xff]  ;;  %v216_v42 = vld [vmem:[%s895_s26 + $0x138] sm:$0xff]  ;;  %v217_v47 = vld [vmem:[%s895_s26 + $0x140] sm:$0xff] }
  0x5b   : > { %384 = vst [vmem:[%s938_s20 + $0x58] sm:$0xff] %v320_v52  ;;  %385 = vst [vmem:[%s938_s20 + $0x60] sm:$0xff] %v321_v53  ;;  %v262_v62 = vmul.f32 %v908_v7, %v196_v44  ;;  %v263_v63 = vmul.f32 %v908_v7, %v197_v49  ;;  %v264_v0 = vmul.f32 %v908_v7, %v198_v50  ;;  %v218_v52 = vld [vmem:[%s895_s26 + $0x148] sm:$0xff]  ;;  %v219_v53 = vld [vmem:[%s895_s26 + $0x150] sm:$0xff] }
  0x5c   : > { %386 = vst [vmem:[%s938_s20 + $0x68] sm:$0xff] %v322_v54  ;;  %387 = vst [vmem:[%s938_s20 + $0x70] sm:$0xff] %v323_v55  ;;  %v265_v1 = vmul.f32 %v908_v7, %v199_v51  ;;  %v325_v5 = vadd.f32 %v912_v10, %v259_v58  ;;  %v326_v6 = vadd.f32 %v912_v10, %v260_v59  ;;  %v220_v54 = vld [vmem:[%s895_s26 + $0x158] sm:$0xff]  ;;  %v221_v59 = vld [vmem:[%s895_s26 + $0x160] sm:$0xff] }
  0x5d   : > { %388 = vst [vmem:[%s938_s20 + $0x78] sm:$0xff] %v324_v57  ;;  %v327_v8 = vadd.f32 %v912_v10, %v261_v60  ;;  %v266_v9 = vmul.f32 %v908_v7, %v200_v56  ;;  %v328_v14 = vadd.f32 %v912_v10, %v262_v62  ;;  %v329_v15 = vadd.f32 %v912_v10, %v263_v63  ;;  %v222_v60 = vld [vmem:[%s895_s26 + $0x168] sm:$0xff] }
  0x5e   : > { %v330_v16 = vadd.f32 %v912_v10, %v264_v0  ;;  %v331_v17 = vadd.f32 %v912_v10, %v265_v1  ;;  %389 = vst [vmem:[%s938_s20 + $0x80] sm:$0xff] %v325_v5  ;;  %390 = vst [vmem:[%s938_s20 + $0x88] sm:$0xff] %v326_v6  ;;  %v267_v20 = vmul.f32 %v908_v7, %v201_v61  ;;  %v223_v61 = vld [vmem:[%s895_s26 + $0x170] sm:$0xff] }
  0x5f   : > { %391 = vst [vmem:[%s938_s20 + $0x90] sm:$0xff] %v327_v8  ;;  %v332_v19 = vadd.f32 %v912_v10, %v266_v9  ;;  %v268_v21 = vmul.f32 %v908_v7, %v202_v2  ;;  %v269_v22 = vmul.f32 %v908_v7, %v203_v3  ;;  %392 = vst [vmem:[%s938_s20 + $0x98] sm:$0xff] %v328_v14  ;;  %v224_v2 = vld [vmem:[%s895_s26 + $0x178] sm:$0xff]  ;;  %v225_v8 = vld [vmem:[%s895_s26 + $0x180] sm:$0xff] }
  0x60   : > { %393 = vst [vmem:[%s938_s20 + $0xa0] sm:$0xff] %v329_v15  ;;  %394 = vst [vmem:[%s938_s20 + $0xa8] sm:$0xff] %v330_v16  ;;  %v270_v24 = vmul.f32 %v908_v7, %v204_v4  ;;  %v271_v25 = vmul.f32 %v908_v7, %v205_v11  ;;  %v272_v26 = vmul.f32 %v908_v7, %v206_v12  ;;  %v226_v14 = vld [vmem:[%s895_s26 + $0x188] sm:$0xff]  ;;  %v227_v15 = vld [vmem:[%s895_s26 + $0x190] sm:$0xff] }
  0x61   : > { %395 = vst [vmem:[%s938_s20 + $0xb0] sm:$0xff] %v331_v17  ;;  %v273_v27 = vmul.f32 %v908_v7, %v207_v13  ;;  %396 = vst [vmem:[%s938_s20 + $0xb8] sm:$0xff] %v332_v19  ;;  %v333_v31 = vadd.f32 %v912_v10, %v267_v20  ;;  %v334_v32 = vadd.f32 %v912_v10, %v268_v21  ;;  %v228_v16 = vld [vmem:[%s895_s26 + $0x198] sm:$0xff]  ;;  %v229_v21 = vld [vmem:[%s895_s26 + $0x1a0] sm:$0xff] }
  0x62   : > { %v335_v33 = vadd.f32 %v912_v10, %v269_v22  ;;  %v274_v34 = vmul.f32 %v908_v7, %v208_v18  ;;  %v336_v38 = vadd.f32 %v912_v10, %v270_v24  ;;  %v337_v39 = vadd.f32 %v912_v10, %v271_v25  ;;  %v230_v22 = vld [vmem:[%s895_s26 + $0x1a8] sm:$0xff] }
  0x63   : > { %v338_v40 = vadd.f32 %v912_v10, %v272_v26  ;;  %v339_v41 = vadd.f32 %v912_v10, %v273_v27  ;;  %397 = vst [vmem:[%s938_s20 + $0xc0] sm:$0xff] %v333_v31  ;;  %398 = vst [vmem:[%s938_s20 + $0xc8] sm:$0xff] %v334_v32  ;;  %v275_v44 = vmul.f32 %v908_v7, %v209_v23  ;;  %v231_v23 = vld [vmem:[%s895_s26 + $0x1b0] sm:$0xff] }
  0x64   : > { %399 = vst [vmem:[%s938_s20 + $0xd0] sm:$0xff] %v335_v33  ;;  %v340_v43 = vadd.f32 %v912_v10, %v274_v34  ;;  %v276_v45 = vmul.f32 %v908_v7, %v210_v28  ;;  %v277_v46 = vmul.f32 %v908_v7, %v211_v29  ;;  %400 = vst [vmem:[%s938_s20 + $0xd8] sm:$0xff] %v336_v38  ;;  %v232_v28 = vld [vmem:[%s895_s26 + $0x1b8] sm:$0xff]  ;;  %v233_v33 = vld [vmem:[%s895_s26 + $0x1c0] sm:$0xff] }
  0x65   : > { %401 = vst [vmem:[%s938_s20 + $0xe0] sm:$0xff] %v337_v39  ;;  %402 = vst [vmem:[%s938_s20 + $0xe8] sm:$0xff] %v338_v40  ;;  %v278_v48 = vmul.f32 %v908_v7, %v212_v30  ;;  %v279_v49 = vmul.f32 %v908_v7, %v213_v35  ;;  %v280_v50 = vmul.f32 %v908_v7, %v214_v36  ;;  %v234_v38 = vld [vmem:[%s895_s26 + $0x1c8] sm:$0xff]  ;;  %v235_v39 = vld [vmem:[%s895_s26 + $0x1d0] sm:$0xff] }
  0x66   : > { %403 = vst [vmem:[%s938_s20 + $0xf0] sm:$0xff] %v339_v41  ;;  %v281_v51 = vmul.f32 %v908_v7, %v215_v37  ;;  %404 = vst [vmem:[%s938_s20 + $0xf8] sm:$0xff] %v340_v43  ;;  %v341_v55 = vadd.f32 %v912_v10, %v275_v44  ;;  %v342_v56 = vadd.f32 %v912_v10, %v276_v45  ;;  %v236_v40 = vld [vmem:[%s895_s26 + $0x1d8] sm:$0xff]  ;;  %v237_v45 = vld [vmem:[%s895_s26 + $0x1e0] sm:$0xff] }
  0x67   : > { %v343_v57 = vadd.f32 %v912_v10, %v277_v46  ;;  %v282_v58 = vmul.f32 %v908_v7, %v216_v42  ;;  %v344_v62 = vadd.f32 %v912_v10, %v278_v48  ;;  %v345_v63 = vadd.f32 %v912_v10, %v279_v49  ;;  %v238_v46 = vld [vmem:[%s895_s26 + $0x1e8] sm:$0xff] }
  0x68   : > { %v346_v0 = vadd.f32 %v912_v10, %v280_v50  ;;  %v347_v1 = vadd.f32 %v912_v10, %v281_v51  ;;  %405 = vst [vmem:[%s938_s20 + $0x100] sm:$0xff] %v341_v55  ;;  %406 = vst [vmem:[%s938_s20 + $0x108] sm:$0xff] %v342_v56  ;;  %v283_v4 = vmul.f32 %v908_v7, %v217_v47  ;;  %v239_v47 = vld [vmem:[%s895_s26 + $0x1f0] sm:$0xff] }
  0x69   : > { %407 = vst [vmem:[%s938_s20 + $0x110] sm:$0xff] %v343_v57  ;;  %v348_v3 = vadd.f32 %v912_v10, %v282_v58  ;;  %v284_v5 = vmul.f32 %v908_v7, %v218_v52  ;;  %v285_v6 = vmul.f32 %v908_v7, %v219_v53  ;;  %408 = vst [vmem:[%s938_s20 + $0x118] sm:$0xff] %v344_v62  ;;  %v240_v52 = vld [vmem:[%s895_s26 + $0x1f8] sm:$0xff] }
  0x6a   : > { %409 = vst [vmem:[%s938_s20 + $0x120] sm:$0xff] %v345_v63  ;;  %410 = vst [vmem:[%s938_s20 + $0x128] sm:$0xff] %v346_v0  ;;  %v286_v9 = vmul.f32 %v908_v7, %v220_v54  ;;  %v287_v11 = vmul.f32 %v908_v7, %v221_v59  ;;  %v288_v12 = vmul.f32 %v908_v7, %v222_v60 }
  0x6b   : > { %411 = vst [vmem:[%s938_s20 + $0x130] sm:$0xff] %v347_v1  ;;  %v289_v13 = vmul.f32 %v908_v7, %v223_v61  ;;  %412 = vst [vmem:[%s938_s20 + $0x138] sm:$0xff] %v348_v3  ;;  %v349_v17 = vadd.f32 %v912_v10, %v283_v4  ;;  %v350_v18 = vadd.f32 %v912_v10, %v284_v5 }
  0x6c   : > { %v351_v19 = vadd.f32 %v912_v10, %v285_v6  ;;  %v290_v20 = vmul.f32 %v908_v7, %v224_v2  ;;  %v352_v24 = vadd.f32 %v912_v10, %v286_v9  ;;  %v353_v25 = vadd.f32 %v912_v10, %v287_v11 }
  0x6d   : > { %v354_v26 = vadd.f32 %v912_v10, %v288_v12  ;;  %v355_v27 = vadd.f32 %v912_v10, %v289_v13  ;;  %413 = vst [vmem:[%s938_s20 + $0x140] sm:$0xff] %v349_v17  ;;  %414 = vst [vmem:[%s938_s20 + $0x148] sm:$0xff] %v350_v18  ;;  %v291_v30 = vmul.f32 %v908_v7, %v225_v8 }
  0x6e   : > { %415 = vst [vmem:[%s938_s20 + $0x150] sm:$0xff] %v351_v19  ;;  %v356_v29 = vadd.f32 %v912_v10, %v290_v20  ;;  %v292_v31 = vmul.f32 %v908_v7, %v226_v14  ;;  %v293_v32 = vmul.f32 %v908_v7, %v227_v15  ;;  %416 = vst [vmem:[%s938_s20 + $0x158] sm:$0xff] %v352_v24 }
  0x6f   : > { %417 = vst [vmem:[%s938_s20 + $0x160] sm:$0xff] %v353_v25  ;;  %418 = vst [vmem:[%s938_s20 + $0x168] sm:$0xff] %v354_v26  ;;  %v294_v34 = vmul.f32 %v908_v7, %v228_v16  ;;  %v295_v35 = vmul.f32 %v908_v7, %v229_v21  ;;  %v296_v36 = vmul.f32 %v908_v7, %v230_v22 }
  0x70   : > { %419 = vst [vmem:[%s938_s20 + $0x170] sm:$0xff] %v355_v27  ;;  %v297_v37 = vmul.f32 %v908_v7, %v231_v23  ;;  %420 = vst [vmem:[%s938_s20 + $0x178] sm:$0xff] %v356_v29  ;;  %v357_v41 = vadd.f32 %v912_v10, %v291_v30  ;;  %v358_v42 = vadd.f32 %v912_v10, %v292_v31 }
  0x71   : > { %v359_v43 = vadd.f32 %v912_v10, %v293_v32  ;;  %v298_v44 = vmul.f32 %v908_v7, %v232_v28  ;;  %v360_v48 = vadd.f32 %v912_v10, %v294_v34  ;;  %v361_v49 = vadd.f32 %v912_v10, %v295_v35 }
  0x72   : > { %v362_v50 = vadd.f32 %v912_v10, %v296_v36  ;;  %v363_v51 = vadd.f32 %v912_v10, %v297_v37  ;;  %421 = vst [vmem:[%s938_s20 + $0x180] sm:$0xff] %v357_v41  ;;  %422 = vst [vmem:[%s938_s20 + $0x188] sm:$0xff] %v358_v42  ;;  %v299_v54 = vmul.f32 %v908_v7, %v233_v33 }
  0x73   : > { %423 = vst [vmem:[%s938_s20 + $0x190] sm:$0xff] %v359_v43  ;;  %v364_v53 = vadd.f32 %v912_v10, %v298_v44  ;;  %v300_v55 = vmul.f32 %v908_v7, %v234_v38  ;;  %v301_v56 = vmul.f32 %v908_v7, %v235_v39  ;;  %424 = vst [vmem:[%s938_s20 + $0x198] sm:$0xff] %v360_v48 }
  0x74   : > { %425 = vst [vmem:[%s938_s20 + $0x1a0] sm:$0xff] %v361_v49  ;;  %426 = vst [vmem:[%s938_s20 + $0x1a8] sm:$0xff] %v362_v50  ;;  %v302_v57 = vmul.f32 %v908_v7, %v236_v40  ;;  %v303_v58 = vmul.f32 %v908_v7, %v237_v45  ;;  %v304_v59 = vmul.f32 %v908_v7, %v238_v46 }
  0x75   : > { %427 = vst [vmem:[%s938_s20 + $0x1b0] sm:$0xff] %v363_v51  ;;  %v305_v60 = vmul.f32 %v908_v7, %v239_v47  ;;  %428 = vst [vmem:[%s938_s20 + $0x1b8] sm:$0xff] %v364_v53  ;;  %v365_v61 = vadd.f32 %v912_v10, %v299_v54  ;;  %v366_v62 = vadd.f32 %v912_v10, %v300_v55 }
  0x76   : > { %v367_v63 = vadd.f32 %v912_v10, %v301_v56  ;;  %v306_v0 = vmul.f32 %v908_v7, %v240_v52  ;;  %v368_v1 = vadd.f32 %v912_v10, %v302_v57  ;;  %v369_v2 = vadd.f32 %v912_v10, %v303_v58 }
  0x77   : > { %v370_v3 = vadd.f32 %v912_v10, %v304_v59  ;;  %v371_v4 = vadd.f32 %v912_v10, %v305_v60  ;;  %429 = vst [vmem:[%s938_s20 + $0x1c0] sm:$0xff] %v365_v61  ;;  %430 = vst [vmem:[%s938_s20 + $0x1c8] sm:$0xff] %v366_v62 }
  0x78   : > { %431 = vst [vmem:[%s938_s20 + $0x1d0] sm:$0xff] %v367_v63  ;;  %v372_v7 = vadd.f32 %v912_v10, %v306_v0  ;;  %432 = vst [vmem:[%s938_s20 + $0x1d8] sm:$0xff] %v368_v1 }
  0x79   : > { %433 = vst [vmem:[%s938_s20 + $0x1e0] sm:$0xff] %v369_v2  ;;  %434 = vst [vmem:[%s938_s20 + $0x1e8] sm:$0xff] %v370_v3 }
  0x7a   : > { %435 = vst [vmem:[%s938_s20 + $0x1f0] sm:$0xff] %v371_v4  ;;  %436 = vst [vmem:[%s938_s20 + $0x1f8] sm:$0xff] %v372_v7 }
  0x7b   : > { %677 = shalt.err (!%p674_p6)
}
  0x7c   : > { %s678_s14 = scalar_lea.hbm %s1161_s5, 8192  ;;  %s682_s3 = scalar_lea.hbm %s1217_s2, 32768 }
  0x7d   : > { %p679_p7 = scmp.ne.s32.totalorder %s1161_s5, %s678_s14  ;;  %p683_p4 = scmp.lt.u32.totalorder %s1161_s5, %s1217_s2 }
  0x7e   : > { %p684_p2 = scmp.lt.u32.totalorder %s682_s3, %s678_s14  ;;  %p686_p12 = scmp.lt.u32.totalorder %s678_s14, %s1161_s5 }
  0x7f   : > { %p680_p8 = pnand %p679_p7, %p1230_p13 }
  0x80   : > { %p685_p11 = por %p684_p2, %p683_p4 }
  0x81   : > { %p681_p9 = pneg %p680_p8 }
  0x82   : > { %p687_p0 = por %p686_p12, %p685_p11 }
  0x84   : > { %p688_p3 = pnand %p687_p0, %p681_p9 }
  0x86   : > { %691 = shalt.err (!%p688_p3)
}
  0x87   : > { %s741_s23 = smov 1024   ;;  %s742_s19 = smov 64  }
  0x88   : > { %566 = dma.vmem_to_hbm [thread:$0]  (%p1230_p13), %s1163_s30, 8192, %s1161_s5, %s438_s6, %s741_s23, %s741_s23, %s742_s19  }
  0x89 PF: > { %p583_p10 = scmp.ge.s32.totalorder %s734_s12, 2  ;;  %s467_s20 = sand.u32 1, %s722_s9  }
  0x8a   : > { %p1231_p5 = scmp.ne.s32.totalorder %s1224_s22, 0  ;;  %s468_s29 = scalar_lea.sflag [#allocation4], %s467_s20 }
  0x8c   : > { %p577_p1 = pnand %p583_p10, %p1231_p5 }
  0x8e   : > { %717 = dma.done.wait (!%p577_p1), %s468_s29, 8192  }
  0x8f   : > { %719 = vsyncadd (!%p577_p1), %s468_s29, 4294959104  ;;  %p16_p6 = scmp.ge.s32.totalorder %s783_s15, 6   ;;  %s1232_s9 = smov %s726_s10 }
  0x90   : > { %s1233_s10 = smov %s730_s11  ;;  %s1234_s11 = smov %s795_s18 }
  0x91   : > { %s1235_s12 = smov %s783_s15  ;;  %18 = sbr.rel (!%p16_p6) target bundleno = 6 (0x6), region = 78 }
  0x98   :  { %473 = vsyncpa [#allocation3], 1 }
  0x99   :  { %475 = vsyncpa [#allocation3 + $0x1], 1 }
  0x9a   :  { %476 = vsyncpa [#allocation4], 1 }
  0x9b   :  { %478 = vsyncpa [#allocation4 + $0x1], 1 }
  0x9c   :  { %479 = vsyncpa [#allocation5], 1 }
  0x9d   :  { %481 = vsyncpa [#allocation5 + $0x1], 1 }

</bundles_post_ra>
